<compile_context>
chip_gen: v5e
topology: v5e:2x2
jax: 0.10.0
libtpu: 0.0.40
codegen_flags: <defaults>
</compile_context>

<pallas_src>
import functools

import jax
import jax.numpy as jnp
from jax.experimental import pallas as pl
from jax.experimental.pallas import tpu as pltpu

Z_DIM = 300
TAU_1 = 1.0
TAU_2 = 1.0


def _round_up(x, m):
    return ((x + m - 1) // m) * m


# --------------------------------------------------------------------------
# Pallas GEMM kernels:  act(A @ B + bias),  A/B bf16, accumulate f32
# --------------------------------------------------------------------------
def _apply_epilogue(r, bias, act, extra=None):
    r = r + bias
    if act == "relu":
        r = jnp.maximum(r, 0.0)
    elif act == "sigmoid":
        r = jax.nn.sigmoid(r)
    elif act == "sigmoid_avg":          # fused (sigmoid(r) + other_decoder) / 2
        r = (jax.nn.sigmoid(r) + extra) * 0.5
    return r


def _mm_single_k_kernel(*refs, act):
    if act == "sigmoid_avg":
        a_ref, b_ref, bias_ref, extra_ref, o_ref = refs
        extra = extra_ref[...].astype(jnp.float32)
    else:
        a_ref, b_ref, bias_ref, o_ref = refs
        extra = None
    r = jnp.dot(a_ref[...], b_ref[...], preferred_element_type=jnp.float32)
    o_ref[...] = _apply_epilogue(r, bias_ref[...], act, extra).astype(o_ref.dtype)


def _mm_multi_k_kernel(a_ref, b_ref, bias_ref, o_ref, acc_ref, *, act, nk):
    k = pl.program_id(2)
    p = jnp.dot(a_ref[...], b_ref[...], preferred_element_type=jnp.float32)

    @pl.when(k == 0)
    def _():
        acc_ref[...] = p                # direct assign (no zero-init pass)

    @pl.when(k > 0)
    def _():
        acc_ref[...] += p

    @pl.when(k == nk - 1)
    def _():
        o_ref[...] = _apply_epilogue(acc_ref[...], bias_ref[...], act).astype(o_ref.dtype)


# ----- tile selection -------------------------------------------------------
def _pick_m(M):
    if M <= 256:
        Mp = _round_up(M, 8)
        return Mp, Mp                   # single M block (tm=8 for the M=2 FC layers)
    if M <= 1024:
        tm = 256
    elif M <= 4096:
        tm = 1024
    else:
        tm = 2048
    return _round_up(M, tm), tm


def _pick_tn(Np, n_m_blocks):
    if Np >= 4096:                      # wide-N fc_dec GEMMs
        for t in (2048, 1024, 512, 256, 128):
            if Np % t == 0:
                return t
    if n_m_blocks >= 2:
        for t in (512, 256, 128):
            if t <= Np and Np % t == 0:
                return t
        return Np
    # single M block: expose >=2 blocks along N when possible (v7x megacore)
    for t in (256, 128):
        if Np % t == 0 and Np // t >= 2:
            return t
    return Np


def _pick_tk(Kp):
    if Kp <= 2304:
        return Kp
    for t in (4096, 2048, 1024, 512, 256, 128):
        if Kp % t == 0:
            return t
    return Kp


def matmul_bias_act(a, b_pad, bias_pad, n_out, act="none",
                    out_dtype=jnp.float32, extra=None, full_output=False):
    """act(a @ B + bias).

    a        : (M, K) activation (f32 or bf16; cast to bf16 here)
    b_pad    : (Kp, Np) bf16 pre-padded weight, Kp/Np multiples of 128
    bias_pad : (1, Np) f32 pre-padded bias
    extra    : optional (Mp, Np) operand used by the 'sigmoid_avg' epilogue
    returns  : (M, n_out) out_dtype, or the full (Mp, Np) buffer if full_output
    """
    M, K = a.shape
    Kp, Np = b_pad.shape
    Mp, tm = _pick_m(M)
    tn = _pick_tn(Np, Mp // tm)
    tk = _pick_tk(Kp)
    nk = Kp // tk

    if (Mp, Kp) != (M, K):
        a = jnp.pad(a, ((0, Mp - M), (0, Kp - K)))
    a = a.astype(jnp.bfloat16)

    # size the scoped VMEM limit from the actual working set (double-buffered)
    out_bytes = jnp.dtype(out_dtype).itemsize
    need = 2 * (tm * tk * 2 + tk * tn * 2 + tm * tn * out_bytes + tn * 4)
    if extra is not None:
        need += 2 * tm * tn * extra.dtype.itemsize
    if nk > 1:
        need += tm * tn * 4
    vmem = min(48 * 1024 * 1024, max(6 * 1024 * 1024, 2 * need))

    if nk == 1:
        inputs = [a, b_pad, bias_pad]
        in_specs = [
            pl.BlockSpec((tm, tk), lambda i, j: (i, 0)),
            pl.BlockSpec((tk, tn), lambda i, j: (0, j)),
            pl.BlockSpec((1, tn), lambda i, j: (0, j)),
        ]
        if act == "sigmoid_avg":
            assert extra is not None and extra.shape == (Mp, Np)
            inputs.append(extra)
            in_specs.append(pl.BlockSpec((tm, tn), lambda i, j: (i, j)))
        out = pl.pallas_call(
            functools.partial(_mm_single_k_kernel, act=act),
            out_shape=jax.ShapeDtypeStruct((Mp, Np), out_dtype),
            grid_spec=pltpu.PrefetchScalarGridSpec(
                num_scalar_prefetch=0,
                grid=(Mp // tm, Np // tn),
                in_specs=in_specs,
                out_specs=pl.BlockSpec((tm, tn), lambda i, j: (i, j)),
            ),
            compiler_params=pltpu.CompilerParams(
                dimension_semantics=("parallel", "parallel"),
                vmem_limit_bytes=vmem),
        )(*inputs)
    else:
        assert act != "sigmoid_avg"
        out = pl.pallas_call(
            functools.partial(_mm_multi_k_kernel, act=act, nk=nk),
            out_shape=jax.ShapeDtypeStruct((Mp, Np), out_dtype),
            grid_spec=pltpu.PrefetchScalarGridSpec(
                num_scalar_prefetch=0,
                grid=(Mp // tm, Np // tn, nk),
                in_specs=[
                    pl.BlockSpec((tm, tk), lambda i, j, k: (i, k)),
                    pl.BlockSpec((tk, tn), lambda i, j, k: (k, j)),
                    pl.BlockSpec((1, tn), lambda i, j, k: (0, j)),
                ],
                out_specs=pl.BlockSpec((tm, tn), lambda i, j, k: (i, j)),
                scratch_shapes=[pltpu.VMEM((tm, tn), jnp.float32)],
            ),
            compiler_params=pltpu.CompilerParams(
                dimension_semantics=("parallel", "parallel", "arbitrary"),
                vmem_limit_bytes=vmem),
        )(a, b_pad, bias_pad)

    if full_output:
        return out
    return out[:M, :n_out]


# --------------------------------------------------------------------------
# Fused Gumbel-softmax for z1 and z2 stacked into one call
# --------------------------------------------------------------------------
def _gumbel_softmax_kernel(logits_ref, noise_ref, o_ref, *, tau1, tau2, b1, zdim):
    u = noise_ref[...]
    g = -jnp.log(-jnp.log(u + 1e-8) + 1e-8)
    row = jax.lax.broadcasted_iota(jnp.int32, logits_ref.shape, 0)
    tau = jnp.where(row < b1, tau1, tau2)
    z = (logits_ref[...] + g) / tau
    col = jax.lax.broadcasted_iota(jnp.int32, z.shape, 1)
    z = jnp.where(col < zdim, z, -1e30)          # mask padded lanes out of softmax
    z = z - jnp.max(z, axis=-1, keepdims=True)
    e = jnp.exp(z)
    o_ref[...] = e / jnp.sum(e, axis=-1, keepdims=True)


def gumbel_softmax_stacked(logits, noise, b1, tau1, tau2):
    # logits/noise: (2B, Z); rows [0,b1) use tau1, the rest tau2.
    B2, Z = logits.shape
    Bp = _round_up(B2, 8)
    Zp = _round_up(Z, 128)
    lp = jnp.pad(logits, ((0, Bp - B2), (0, Zp - Z)))
    up = jnp.pad(noise, ((0, Bp - B2), (0, Zp - Z)), constant_values=0.5)
    out = pl.pallas_call(
        functools.partial(_gumbel_softmax_kernel, tau1=tau1, tau2=tau2,
                          b1=b1, zdim=Z),
        out_shape=jax.ShapeDtypeStruct((Bp, Zp), jnp.float32),
    )(lp, up)
    return out[:B2, :Z]


# --------------------------------------------------------------------------
# Conv / ConvTranspose (channels-last) as im2col GEMMs
# --------------------------------------------------------------------------
def _im2col_nhwc(x, kh, kw, stride, pad_h, pad_w):
    # x: (N, H, W, C); feature order of the result is (kh, kw, C), C innermost.
    x = jnp.pad(x, ((0, 0), pad_h, pad_w, (0, 0)))
    N, H, W, C = x.shape
    oh = (H - kh) // stride + 1
    ow = (W - kw) // stride + 1
    taps = []
    for i in range(kh):
        for j in range(kw):
            taps.append(x[:, i:i + stride * oh:stride, j:j + stride * ow:stride, :])
    cols = jnp.concatenate(taps, axis=-1)        # (N, oh, ow, kh*kw*C)
    return cols.reshape(N * oh * ow, kh * kw * C), oh, ow


def conv2d_nhwc(x, wmat, bias_pad, cout, act="relu", out_dtype=jnp.bfloat16):
    # Conv2d(k=4, s=2, p=1), NHWC activations.
    cols, oh, ow = _im2col_nhwc(x, 4, 4, 2, (1, 1), (1, 1))
    y = matmul_bias_act(cols, wmat, bias_pad, n_out=cout, act=act,
                        out_dtype=out_dtype)
    return y.reshape(x.shape[0], oh, ow, cout)


def conv_transpose2d_fused(x, wmat, bias_pad, cout, act="relu",
                           out_dtype=jnp.bfloat16, extra=None, full_output=False):
    # ConvTranspose2d(k=4, s=2, p=1) as ONE GEMM: 3x3 im2col of the (1,1)-padded
    # input against a (9*Cin, 4*Cout) phase-scattered weight; the 4*Cout columns
    # are ordered (row-parity, col-parity, cout) so they interleave directly.
    n, h, w, _ = x.shape
    cols, _, _ = _im2col_nhwc(x, 3, 3, 1, (1, 1), (1, 1))
    y = matmul_bias_act(cols, wmat, bias_pad, n_out=4 * cout, act=act,
                        out_dtype=out_dtype, extra=extra, full_output=full_output)
    if full_output:
        return y                                  # (Mp, Np) pre-interleave buffer
    y = y.reshape(n, h, w, 2, 2, cout)
    y = y.transpose(0, 1, 3, 2, 4, 5).reshape(n, 2 * h, 2 * w, cout)
    return y


# --------------------------------------------------------------------------
# Parameters: PyTorch-layout synthetic init + GEMM-ready preparation
# --------------------------------------------------------------------------
def init_params(key):
    shapes = {
        "conv1_w": (32, 3, 4, 4), "conv1_b": (32,),
        "conv2_w": (64, 32, 4, 4), "conv2_b": (64,),
        "conv3_w": (128, 64, 4, 4), "conv3_b": (128,),
        "conv4_w": (256, 128, 4, 4), "conv4_b": (256,),
        "fc_z1_w": (Z_DIM, 256 * 8 * 8), "fc_z1_b": (Z_DIM,),
        "fc_z2_w": (Z_DIM, Z_DIM), "fc_z2_b": (Z_DIM,),
        "fc_dec1_w": (256 * 8 * 8, Z_DIM), "fc_dec1_b": (256 * 8 * 8,),
        "fc_dec2_w": (128 * 16 * 16, Z_DIM), "fc_dec2_b": (128 * 16 * 16,),
        "ct11_w": (256, 128, 4, 4), "ct11_b": (128,),
        "ct21_w": (128, 64, 4, 4), "ct21_b": (64,),
        "ct31_w": (64, 32, 4, 4), "ct31_b": (32,),
        "ct41_w": (32, 3, 4, 4), "ct41_b": (3,),
        "ct12_w": (128, 64, 4, 4), "ct12_b": (64,),
        "ct22_w": (64, 32, 4, 4), "ct22_b": (32,),
        "ct32_w": (32, 3, 4, 4), "ct32_b": (3,),
    }
    params = {}
    keys = jax.random.split(key, len(shapes))
    for k_rng, (name, shp) in zip(keys, sorted(shapes.items())):
        if name.endswith("_b"):
            params[name] = jnp.zeros(shp, jnp.float32)
        else:
            params[name] = 0.05 * jax.random.normal(k_rng, shp, jnp.float32)
    return params


def _pad_b(mat):
    K, N = mat.shape
    Kp, Np = _round_up(K, 128), _round_up(N, 128)
    return jnp.pad(mat, ((0, Kp - K), (0, Np - N))).astype(jnp.bfloat16)


def _pad_bias(b):
    N = b.shape[0]
    Np = _round_up(N, 128)
    return jnp.pad(b, (0, Np - N)).reshape(1, Np).astype(jnp.float32)


def _prep_conv(w, b):
    # w: (Cout, Cin, kh, kw) -> (kh*kw*Cin, Cout), features ordered (kh, kw, Cin)
    cout, cin, kh, kw = w.shape
    wm = w.transpose(2, 3, 1, 0).reshape(kh * kw * cin, cout)
    return _pad_b(wm), _pad_bias(b)


# output-row-parity -> ((window-row, kernel-tap), (window-row, kernel-tap))
_PHASE_ROW_TAPS = {0: ((0, 3), (1, 1)), 1: ((1, 2), (2, 0))}


def _prep_convT_fused(w, b):
    # w: (Cin, Cout, 4, 4) ConvTranspose2d -> one (9*Cin, 4*Cout) matrix where the
    # 3x3 window rows of the (1,1)-padded input select the correct taps per output
    # parity; column order is (phase = po*2+pw, cout).
    cin, cout, _, _ = w.shape
    big = jnp.zeros((3, 3, cin, 4 * cout), w.dtype)
    for po in (0, 1):
        for pw in (0, 1):
            ph = po * 2 + pw
            for dr, kh in _PHASE_ROW_TAPS[po]:
                for dc, kw in _PHASE_ROW_TAPS[pw]:
                    big = big.at[dr, dc, :, ph * cout:(ph + 1) * cout].set(
                        w[:, :, kh, kw])
    wmat = big.reshape(9 * cin, 4 * cout)
    bias = jnp.tile(b, 4)
    return _pad_b(wmat), _pad_bias(bias)


def prepare_params(params):
    prep = {}
    for i in (1, 2, 3, 4):
        prep[f"conv{i}"] = _prep_conv(params[f"conv{i}_w"], params[f"conv{i}_b"])

    # fc_z1: torch columns indexed (c,h,w); reorder to NHWC-flatten (h,w,c) order.
    w = params["fc_z1_w"].reshape(Z_DIM, 256, 8, 8)
    w = w.transpose(2, 3, 1, 0).reshape(256 * 8 * 8, Z_DIM)
    prep["fc_z1"] = (_pad_b(w), _pad_bias(params["fc_z1_b"]))

    prep["fc_z2"] = (_pad_b(params["fc_z2_w"].T), _pad_bias(params["fc_z2_b"]))

    # fc_dec: torch outputs indexed (c,h,w); reorder to (h,w,c) so the GEMM output
    # reshapes directly to NHWC.
    w = params["fc_dec1_w"].reshape(256, 8, 8, Z_DIM)
    w = w.transpose(1, 2, 0, 3).reshape(256 * 8 * 8, Z_DIM).T
    b = params["fc_dec1_b"].reshape(256, 8, 8).transpose(1, 2, 0).reshape(-1)
    prep["fc_dec1"] = (_pad_b(w), _pad_bias(b))

    w = params["fc_dec2_w"].reshape(128, 16, 16, Z_DIM)
    w = w.transpose(1, 2, 0, 3).reshape(128 * 16 * 16, Z_DIM).T
    b = params["fc_dec2_b"].reshape(128, 16, 16).transpose(1, 2, 0).reshape(-1)
    prep["fc_dec2"] = (_pad_b(w), _pad_bias(b))

    for name in ("ct11", "ct21", "ct31", "ct41", "ct12", "ct22", "ct32"):
        prep[name] = _prep_convT_fused(params[f"{name}_w"], params[f"{name}_b"])
    return prep


# --------------------------------------------------------------------------
# Forward pass
# --------------------------------------------------------------------------
def forward(prep, x, rng):
    n = x.shape[0]
    x = jnp.transpose(x, (0, 2, 3, 1)).astype(jnp.bfloat16)   # NCHW -> NHWC once

    # ---- encode (bf16 activations, f32 accumulation) ----
    h = conv2d_nhwc(x, *prep["conv1"], cout=32)
    h = conv2d_nhwc(h, *prep["conv2"], cout=64)
    h = conv2d_nhwc(h, *prep["conv3"], cout=128)
    h = conv2d_nhwc(h, *prep["conv4"], cout=256)
    h = h.reshape(n, -1)                         # NHWC flatten; fc_z1 reordered to match
    logits_z1 = matmul_bias_act(h, *prep["fc_z1"], n_out=Z_DIM,
                                act="none", out_dtype=jnp.float32)
    logits_z2 = matmul_bias_act(logits_z1, *prep["fc_z2"], n_out=Z_DIM,
                                act="none", out_dtype=jnp.float32)

    # ---- reparameterize: one fused gumbel-softmax over both stacked logits ----
    # TODO(synk): move the uniform draw in-kernel via pltpu.prng_random_bits.
    noise = jax.random.uniform(rng, (2 * n, Z_DIM), jnp.float32)
    z12 = gumbel_softmax_stacked(
        jnp.concatenate([logits_z1, logits_z2], axis=0), noise, n, TAU_1, TAU_2)
    z1, z2 = z12[:n], z12[n:]

    # ---- decode2 first (its sigmoid output is averaged inside the last
    #      decode1 GEMM epilogue) ----
    d2 = matmul_bias_act(z2, *prep["fc_dec2"], n_out=128 * 16 * 16,
                         act="none", out_dtype=jnp.bfloat16).reshape(n, 16, 16, 128)
    d2 = conv_transpose2d_fused(d2, *prep["ct12"], cout=64)
    d2 = conv_transpose2d_fused(d2, *prep["ct22"], cout=32)
    s2 = conv_transpose2d_fused(d2, *prep["ct32"], cout=3, act="sigmoid",
                                out_dtype=jnp.bfloat16, full_output=True)

    # ---- decode1; final layer fuses sigmoid + 0.5*(. + s2) ----
    d1 = matmul_bias_act(z1, *prep["fc_dec1"], n_out=256 * 8 * 8,
                         act="none", out_dtype=jnp.bfloat16).reshape(n, 8, 8, 256)
    d1 = conv_transpose2d_fused(d1, *prep["ct11"], cout=128)
    d1 = conv_transpose2d_fused(d1, *prep["ct21"], cout=64)
    d1 = conv_transpose2d_fused(d1, *prep["ct31"], cout=32)
    x_hat = conv_transpose2d_fused(d1, *prep["ct41"], cout=3, act="sigmoid_avg",
                                   out_dtype=jnp.float32, extra=s2)

    x_hat = jnp.transpose(x_hat, (0, 3, 1, 2))   # NHWC -> NCHW (once)
    return x_hat, logits_z1, logits_z2, z1, z2


# --------------------------------------------------------------------------
# Plain-JAX references for one-time parity tests
# --------------------------------------------------------------------------
def _convT_ref_nhwc(x, w, b):
    # PyTorch ConvTranspose2d(k=4, s=2, p=1) reference (direct scatter), NHWC.
    N, H, W, _ = x.shape
    _, cout, kh, kw = w.shape
    s, p = 2, 1
    full = jnp.zeros((N, (H - 1) * s + kh, (W - 1) * s + kw, cout), jnp.float32)
    for a in range(kh):
        for c in range(kw):
            contrib = jnp.einsum("nhwi,io->nhwo", x, w[:, :, a, c])
            full = full.at[:, a:a + (H - 1) * s + 1:s,
                           c:c + (W - 1) * s + 1:s, :].add(contrib)
    oh = (H - 1) * s - 2 * p + kh
    ow = (W - 1) * s - 2 * p + kw
    return full[:, p:p + oh, p:p + ow, :] + b


def _encode_ref(params, x_nchw):
    h = x_nchw
    for i in (1, 2, 3, 4):
        w, b = params[f"conv{i}_w"], params[f"conv{i}_b"]
        h = jax.lax.conv_general_dilated(h, w, (2, 2), ((1, 1), (1, 1)),
                                         dimension_numbers=("NCHW", "OIHW", "NCHW"))
        h = jax.nn.relu(h + b[None, :, None, None])
    h = h.reshape(h.shape[0], -1)
    l1 = h @ params["fc_z1_w"].T + params["fc_z1_b"]
    l2 = l1 @ params["fc_z2_w"].T + params["fc_z2_b"]
    return l1, l2


# --------------------------------------------------------------------------
if __name__ == "__main__":
    key = jax.random.PRNGKey(0)
    (k_param, k_input, k_noise,
     k_t1, k_t2, k_t3, k_t4) = jax.random.split(key, 7)

    params = init_params(k_param)
    prep = prepare_params(params)

    # --- one-time parity test: fused ConvTranspose2d vs direct scatter ref ---
    xt = jax.random.normal(k_t1, (2, 8, 8, 8), jnp.float32)
    wt = 0.2 * jax.random.normal(k_t2, (8, 8, 4, 4), jnp.float32)
    bt = 0.1 * jax.random.normal(k_t3, (8,), jnp.float32)
    wmat_t, bias_t = _prep_convT_fused(wt, bt)
    got = conv_transpose2d_fused(xt, wmat_t, bias_t, cout=8, act="none",
                                 out_dtype=jnp.float32)
    ref = _convT_ref_nhwc(xt, wt, bt)
    errA = float(jnp.max(jnp.abs(got - ref)))
    assert errA < 0.25, f"convT parity test failed: max err {errA}"

    # --- fc_dec1 column-reorder check (torch (c,h,w) order -> NHWC) ---
    zt = jax.random.normal(k_t4, (2, Z_DIM), jnp.float32)
    got = matmul_bias_act(zt, *prep["fc_dec1"], n_out=256 * 8 * 8,
                          act="none", out_dtype=jnp.float32).reshape(2, 8, 8, 256)
    ref = (zt @ params["fc_dec1_w"].T + params["fc_dec1_b"]).reshape(2, 256, 8, 8)
    ref = jnp.transpose(ref, (0, 2, 3, 1))
    errC = float(jnp.max(jnp.abs(got - ref)))
    assert errC < 0.25, f"fc_dec1 reorder test failed: max err {errC}"

    # --- full forward ---
    # Spatial size is fixed at 128x128 by fc_logits_z1 (256*8*8); batch kept small.
    x = jax.random.uniform(k_input, (2, 3, 128, 128), jnp.float32)
    fwd = jax.jit(forward)
    outs = fwd(prep, x, k_noise)
    jax.block_until_ready(outs)
    x_hat, logits_z1, logits_z2, z1, z2 = outs

    assert x_hat.shape == (2, 3, 128, 128)
    assert logits_z1.shape == (2, Z_DIM) and logits_z2.shape == (2, Z_DIM)
    assert z1.shape == (2, Z_DIM) and z2.shape == (2, Z_DIM)
    assert float(jnp.min(x_hat)) >= -1e-3 and float(jnp.max(x_hat)) <= 1.0 + 1e-3
    assert bool(jnp.allclose(jnp.sum(z1, axis=-1), 1.0, atol=1e-3))
    assert bool(jnp.allclose(jnp.sum(z2, axis=-1), 1.0, atol=1e-3))

    # --- encoder parity (deterministic path) vs f32 XLA reference ---
    l1_ref, l2_ref = _encode_ref(params, x)
    e1 = float(jnp.max(jnp.abs(logits_z1 - l1_ref)))
    e2 = float(jnp.max(jnp.abs(logits_z2 - l2_ref)))
    assert e1 < 0.35 and e2 < 0.35, f"encoder parity failed: ({e1}, {e2})"

    print("KERNEL_OK")
</pallas_src>

<mosaic_0001>
module attributes {stable_mosaic.version = 11 : i64} {
  func.func @_mm_single_k_kernel(%arg0: i32, %arg1: i32, %arg2: memref<128x128xbf16, #tpu.memory_space<vmem>>, %arg3: memref<128x128xbf16, #tpu.memory_space<vmem>>, %arg4: memref<1x128xf32, #tpu.memory_space<vmem>>, %arg5: memref<128x128xf32, #tpu.memory_space<vmem>>) attributes {dimension_semantics = [#tpu.dimension_semantics<parallel>, #tpu.dimension_semantics<parallel>], iteration_bounds = array<i64: 1, 1>, scalar_prefetch = 0 : i64, scratch_operands = 0 : i64, tpu.core_type = #tpu.core_type<tc>, window_params = [{transform_indices = @transform_0, window_bounds = array<i64: 128, 128>}, {transform_indices = @transform_1, window_bounds = array<i64: 128, 128>}, {transform_indices = @transform_2, window_bounds = array<i64: 1, 128>}, {transform_indices = @transform_3, window_bounds = array<i64: 128, 128>}]} {
    %c0 = arith.constant 0 : index
    %c0_0 = arith.constant 0 : index
    %0 = vector.load %arg2[%c0, %c0_0] : memref<128x128xbf16, #tpu.memory_space<vmem>>, vector<128x128xbf16>
    %c0_1 = arith.constant 0 : index
    %c0_2 = arith.constant 0 : index
    %1 = vector.load %arg3[%c0_1, %c0_2] : memref<128x128xbf16, #tpu.memory_space<vmem>>, vector<128x128xbf16>
    %cst = arith.constant dense<0.000000e+00> : vector<128x128xf32>
    %2 = tpu.matmul %0, %1, %cst {dimension_numbers = #tpu.dot_dimension_numbers<[1], [0], [0], [1], [0, 0, 1, 1], [], []>} : vector<128x128xbf16>, vector<128x128xbf16>, vector<128x128xf32> -> vector<128x128xf32>
    %c0_3 = arith.constant 0 : index
    %c0_4 = arith.constant 0 : index
    %3 = vector.load %arg4[%c0_3, %c0_4] : memref<1x128xf32, #tpu.memory_space<vmem>>, vector<1x128xf32>
    %4 = vector.broadcast %3 : vector<1x128xf32> to vector<128x128xf32>
    %5 = arith.addf %2, %4 : vector<128x128xf32>
    %c0_5 = arith.constant 0 : index
    %c0_6 = arith.constant 0 : index
    %6 = vector.load %arg5[%c0_5, %c0_6] : memref<128x128xf32, #tpu.memory_space<vmem>>, vector<128x128xf32>
    tpu.vector_store %arg5[%c0_5, %c0_6], %5 {strides = array<i32>} : memref<128x128xf32, #tpu.memory_space<vmem>>, vector<128x128xf32>,
    return
  }
  func.func @transform_0(%arg0: i32, %arg1: i32) -> (i32, i32) {
    %c0_i32 = arith.constant 0 : i32
    %c0_i32_0 = arith.constant 0 : i32
    return %arg0, %c0_i32 : i32, i32
  }
  func.func @transform_1(%arg0: i32, %arg1: i32) -> (i32, i32) {
    %c0_i32 = arith.constant 0 : i32
    %c0_i32_0 = arith.constant 0 : i32
    return %c0_i32, %arg1 : i32, i32
  }
  func.func @transform_2(%arg0: i32, %arg1: i32) -> (i32, i32) {
    %c0_i32 = arith.constant 0 : i32
    %c0_i32_0 = arith.constant 0 : i32
    return %c0_i32, %arg1 : i32, i32
  }
  func.func @transform_3(%arg0: i32, %arg1: i32) -> (i32, i32) {
    %c0_i32 = arith.constant 0 : i32
    return %arg0, %arg1 : i32, i32
  }
}

</mosaic_0001>

<bundles_post_ra>
// kernel: tpu_custom_call.1
= control target key start
LH: loop header
LB: loop body
LE: loop exit
PB: predicated region body
PF: predicated region fallthrough
CT: control target
= control target key end

     0   :  { %8 = vsyncpa [#allocation3], 0  ;;  %s493_s0 = inlined_call_operand.hbm [shape: bf16[128,128], index: 0, kind: input, shape index: {}]   ;;  %s494_s1 = inlined_call_operand.hbm [shape: bf16[128,128], index: 1, kind: input, shape index: {}]   ;;  %s495_s2 = inlined_call_operand.vmem [shape: f32[1,128], index: 2, kind: input, shape index: {}]   ;;  %s496_s3 = inlined_call_operand.hbm [shape: f32[128,128], index: 3, kind: output, shape index: {}]  }
   0x1   :  { %9 = vsyncpa [#allocation6], 0 }
   0x2   :  { %10 = vsyncpa [#allocation4], 0  ;;  %s15_s14 = sshll.u32 %s493_s0, 4  ;;  %s454_s15 = smov [#allocation2]   ;;  %s16_s14 = int_to_ptr.hbm [resolvable:$true] %s15_s14 }
   0x3   :  { %s17_s16 = sshll.u32 %s454_s15, 4  ;;  %s28_s19 = sshll.u32 %s494_s1, 4  ;;  %s18_s16 = int_to_ptr.vmem [resolvable:$true] %s17_s16  ;;  %s29_s19 = int_to_ptr.hbm [resolvable:$true] %s28_s19 }
   0x4   :  { %s455_s20 = smov 64   ;;  %s456_s21 = smov 4  }
   0x5   :  { %23 = dma.hbm_to_vmem [thread:$0]  %s16_s14, 1024, %s18_s16, [#allocation3], %s455_s20, %s455_s20, %s456_s21  }
   0x6   :  { %s457_s22 = smov [#allocation5]  }
   0x7   :  { %s30_s23 = sshll.u32 %s457_s22, 4  ;;  %s31_s23 = int_to_ptr.vmem [resolvable:$true] %s30_s23 }
   0x8   :  { %36 = dma.hbm_to_vmem [thread:$0]  %s29_s19, 1024, %s31_s23, [#allocation6], %s455_s20, %s455_s20, %s456_s21  }
   0x9   :  { %448 = dma.done.wait [#allocation3], 1024  }
   0xa   :  { %449 = vsyncadd [#allocation3], 4294966272 }
   0xb   :  { %450 = dma.done.wait [#allocation6], 1024  }
   0xc   :  { %451 = vsyncadd [#allocation6], 4294966272  ;;  %v343_v0 = vld [vmem:[#allocation5 + $0x38] sm:$0xff]  ;;  %v342_v1 = vld [vmem:[#allocation5 + $0x30] sm:$0xff]  ;;  %s250_s27 = sshll.u32 %s496_s3, 4  ;;  %s459_s28 = smov 128   ;;  %s251_s27 = int_to_ptr.hbm [resolvable:$true] %s250_s27 }
   0xd   :  { %179 = vmatpush.bf16.msra.mxu0 %v343_v0  ;;  %344 = vmatpush.bf16.msra.mxu1 %v343_v0  ;;  %v341_v2 = vld [vmem:[#allocation5 + $0x28] sm:$0xff]  ;;  %v340_v3 = vld [vmem:[#allocation5 + $0x20] sm:$0xff]  ;;  %v339_v4 = vld [vmem:[#allocation5 + $0x18] sm:$0xff]  ;;  %s460_s29 = smov 8  }
   0xe   :  { %345 = vmatpush.bf16.msra.mxu2 %v343_v0  ;;  %346 = vmatpush.bf16.msra.mxu3 %v343_v0  ;;  %v338_v5 = vld [vmem:[#allocation5 + $0x10] sm:$0xff]  ;;  %v337_v6 = vld [vmem:[#allocation5 + $0x8] sm:$0xff]  ;;  %v336_v7 = vld [vmem:[#allocation5] sm:$0xff] }
   0xf   :  { %v328_v8 = vld [vmem:[#allocation2] sm:$0xff]  ;;  %v330_v9 = vld [vmem:[#allocation2 + $0x10] sm:$0xff]  ;;  %v329_v12 = vld [vmem:[#allocation2 + $0x8] sm:$0xff] }
  0x10   :  { %v332_v10 = vld [vmem:[#allocation2 + $0x20] sm:$0xff]  ;;  %v334_v11 = vld [vmem:[#allocation2 + $0x30] sm:$0xff]  ;;  %v331_v13 = vld [vmem:[#allocation2 + $0x18] sm:$0xff] }
  0x11   :  { %180 = vmatpush.bf16.msra.mxu0 %v342_v1  ;;  %347 = vmatpush.bf16.msra.mxu1 %v342_v1  ;;  %v333_v14 = vld [vmem:[#allocation2 + $0x28] sm:$0xff]  ;;  %v335_v15 = vld [vmem:[#allocation2 + $0x38] sm:$0xff]  ;;  %v375_v16 = vld [vmem:[%s495_s2] ss:$0 sm:$0xff]  ;;  %s458_s2 = smov [#allocation7]  }
  0x12   :  { %348 = vmatpush.bf16.msra.mxu2 %v342_v1  ;;  %349 = vmatpush.bf16.msra.mxu3 %v342_v1  ;;  %s248_s24 = sshll.u32 %s458_s2, 4  ;;  %s249_s24 = int_to_ptr.vmem [resolvable:$true] %s248_s24 }
  0x15   :  { %181 = vmatpush.bf16.msra.mxu0 %v341_v2  ;;  %350 = vmatpush.bf16.msra.mxu1 %v341_v2 }
  0x16   :  { %351 = vmatpush.bf16.msra.mxu2 %v341_v2  ;;  %352 = vmatpush.bf16.msra.mxu3 %v341_v2 }
  0x19   :  { %182 = vmatpush.bf16.msra.mxu0 %v340_v3  ;;  %353 = vmatpush.bf16.msra.mxu1 %v340_v3 }
  0x1a   :  { %354 = vmatpush.bf16.msra.mxu2 %v340_v3  ;;  %355 = vmatpush.bf16.msra.mxu3 %v340_v3 }
  0x1d   :  { %183 = vmatpush.bf16.msra.mxu0 %v339_v4  ;;  %356 = vmatpush.bf16.msra.mxu1 %v339_v4 }
  0x1e   :  { %357 = vmatpush.bf16.msra.mxu2 %v339_v4  ;;  %358 = vmatpush.bf16.msra.mxu3 %v339_v4 }
  0x21   :  { %184 = vmatpush.bf16.msra.mxu0 %v338_v5  ;;  %359 = vmatpush.bf16.msra.mxu1 %v338_v5 }
  0x22   :  { %360 = vmatpush.bf16.msra.mxu2 %v338_v5  ;;  %361 = vmatpush.bf16.msra.mxu3 %v338_v5 }
  0x25   :  { %185 = vmatpush.bf16.msra.mxu0 %v337_v6  ;;  %362 = vmatpush.bf16.msra.mxu1 %v337_v6 }
  0x26   :  { %363 = vmatpush.bf16.msra.mxu2 %v337_v6  ;;  %364 = vmatpush.bf16.msra.mxu3 %v337_v6 }
  0x29   :  { %186 = vmatpush.bf16.msra.mxu0 %v336_v7  ;;  %365 = vmatpush.bf16.msra.mxu1 %v336_v7 }
  0x2a   :  { %366 = vmatpush.bf16.msra.mxu2 %v336_v7  ;;  %367 = vmatpush.bf16.msra.mxu3 %v336_v7 }
  0x2c   :  { %187 = vmatmul.bf16.vlgmr.msra.gmra.mxu0 %v328_v8  ;;  %197 = vmatmul.bf16.vlgmr.msra.gmra.mxu1 %v330_v9 }
  0x2d   :  { %207 = vmatmul.bf16.vlgmr.msra.gmra.mxu2 %v332_v10  ;;  %217 = vmatmul.bf16.vlgmr.msra.gmra.mxu3 %v334_v11 }
  0x3c   :  { %192 = vmatmul.bf16.gmra.mxu0 %v329_v12  ;;  %202 = vmatmul.bf16.gmra.mxu1 %v331_v13 }
  0x3d   :  { %212 = vmatmul.bf16.gmra.mxu2 %v333_v14  ;;  %222 = vmatmul.bf16.gmra.mxu3 %v335_v15 }
  0xa9   :  { %v188_v17 = vpop.f32.mrf.mxu0  ;;  %v198_v18 = vpop.f32.mrf.mxu1 }
  0xaa   :  { %v189_v19 = vadd.f32 %v375_v16, %v188_v17  ;;  %v199_v20 = vadd.f32 %v375_v16, %v198_v18 }
  0xac   :  { %228 = vst [vmem:[#allocation7] sm:$0xff] %v189_v19 }
  0xad   :  { %232 = vst [vmem:[#allocation7 + $0x20] sm:$0xff] %v199_v20 }
  0xb0   :  { %v208_v21 = vpop.f32.mrf.mxu2  ;;  %v218_v22 = vpop.f32.mrf.mxu3 }
  0xb1   :  { %v209_v23 = vadd.f32 %v375_v16, %v208_v21  ;;  %v219_v24 = vadd.f32 %v375_v16, %v218_v22  ;;  %v190_v25 = vpop.f32.mrf.mxu0  ;;  %v200_v26 = vpop.f32.mrf.mxu1 }
  0xb2   :  { %v191_v27 = vadd.f32 %v375_v16, %v190_v25  ;;  %v201_v28 = vadd.f32 %v375_v16, %v200_v26 }
  0xb3   :  { %236 = vst [vmem:[#allocation7 + $0x40] sm:$0xff] %v209_v23 }
  0xb4   :  { %240 = vst [vmem:[#allocation7 + $0x60] sm:$0xff] %v219_v24 }
  0xb5   :  { %229 = vst [vmem:[#allocation7 + $0x8] sm:$0xff] %v191_v27 }
  0xb6   :  { %233 = vst [vmem:[#allocation7 + $0x28] sm:$0xff] %v201_v28 }
  0xb8   :  { %v210_v29 = vpop.f32.mrf.mxu2  ;;  %v220_v30 = vpop.f32.mrf.mxu3 }
  0xb9   :  { %v211_v31 = vadd.f32 %v375_v16, %v210_v29  ;;  %v221_v32 = vadd.f32 %v375_v16, %v220_v30  ;;  %v193_v33 = vpop.f32.mrf.mxu0  ;;  %v203_v34 = vpop.f32.mrf.mxu1 }
  0xba   :  { %v194_v35 = vadd.f32 %v375_v16, %v193_v33  ;;  %v204_v36 = vadd.f32 %v375_v16, %v203_v34 }
  0xbb   :  { %237 = vst [vmem:[#allocation7 + $0x48] sm:$0xff] %v211_v31 }
  0xbc   :  { %241 = vst [vmem:[#allocation7 + $0x68] sm:$0xff] %v221_v32 }
  0xbd   :  { %230 = vst [vmem:[#allocation7 + $0x10] sm:$0xff] %v194_v35 }
  0xbe   :  { %234 = vst [vmem:[#allocation7 + $0x30] sm:$0xff] %v204_v36 }
  0xc0   :  { %v213_v37 = vpop.f32.mrf.mxu2  ;;  %v223_v38 = vpop.f32.mrf.mxu3 }
  0xc1   :  { %v214_v39 = vadd.f32 %v375_v16, %v213_v37  ;;  %v224_v40 = vadd.f32 %v375_v16, %v223_v38  ;;  %v195_v41 = vpop.f32.mrf.mxu0  ;;  %v205_v42 = vpop.f32.mrf.mxu1 }
  0xc2   :  { %v196_v43 = vadd.f32 %v375_v16, %v195_v41  ;;  %v206_v44 = vadd.f32 %v375_v16, %v205_v42 }
  0xc3   :  { %238 = vst [vmem:[#allocation7 + $0x50] sm:$0xff] %v214_v39 }
  0xc4   :  { %242 = vst [vmem:[#allocation7 + $0x70] sm:$0xff] %v224_v40 }
  0xc5   :  { %231 = vst [vmem:[#allocation7 + $0x18] sm:$0xff] %v196_v43 }
  0xc6   :  { %235 = vst [vmem:[#allocation7 + $0x38] sm:$0xff] %v206_v44 }
  0xc8   :  { %v215_v45 = vpop.f32.mrf.mxu2  ;;  %v225_v46 = vpop.f32.mrf.mxu3 }
  0xc9   :  { %v216_v47 = vadd.f32 %v375_v16, %v215_v45  ;;  %v226_v48 = vadd.f32 %v375_v16, %v225_v46 }
  0xcb   :  { %239 = vst [vmem:[#allocation7 + $0x58] sm:$0xff] %v216_v47 }
  0xcc   :  { %243 = vst [vmem:[#allocation7 + $0x78] sm:$0xff] %v226_v48 }
  0xcd   :  { %256 = dma.vmem_to_hbm [thread:$0]  %s249_s24, 2048, %s251_s27, [#allocation4], %s459_s28, %s459_s28, %s460_s29  }
  0xce   :  { %452 = dma.done.wait [#allocation4], 2048  }
  0xcf   :  { %453 = vsyncadd [#allocation4], 4294965248 }
  0xd0   :  { %261 = vsyncpa [#allocation3], 1 }
  0xd1   :  { %262 = vsyncpa [#allocation6], 1 }
  0xd2   :  { %263 = vsyncpa [#allocation4], 1 }

</bundles_post_ra>
